<compile_context>
chip_gen: v5e
topology: v5e:2x2
jax: 0.10.0
libtpu: 0.0.40
codegen_flags: <defaults>
</compile_context>

<pallas_src>
import functools

import jax
import jax.numpy as jnp
from jax.experimental import pallas as pl
from jax.experimental.pallas import tpu as pltpu


def decoder_kernel(atten_ref, conv_ref, w_ref, b_ref, out_ref):
    # atten_ref: (Bt, K, HW)     bf16
    # conv_ref:  (Bt, HW, C)     bf16   (pre-permuted: contraction lane x sublane)
    # w_ref:     (C, nclass)     f32    (pre-transposed fc weight, resident)
    # b_ref:     (1, nclass)     f32    (resident)
    # out_ref:   (Bt, K, nclass) f32
    atten = atten_ref[...]
    conv = conv_ref[...]

    # Batched bmm over the spatial axis: (Bt,K,HW) x (Bt,HW,C) -> (Bt,K,C), f32 acc.
    atten_out = jnp.einsum(
        "bks,bsc->bkc", atten, conv, preferred_element_type=jnp.float32
    )

    bt, k, c = atten_out.shape
    n = w_ref.shape[1]

    # FC batched across the whole tile: one (Bt*K, C) @ (C, nclass) matmul.
    # (Leading-dim collapse is layout-preserving since K == 8 == sublane tile.)
    x = atten_out.reshape(bt * k, c)
    logits = jnp.dot(x, w_ref[...], preferred_element_type=jnp.float32)
    logits = logits + b_ref[...]

    out_ref[...] = logits.reshape(bt, k, n).astype(out_ref.dtype)


@functools.partial(jax.jit, static_argnames=("K", "b_tile"))
def decoder_forward(atten, conv_out, fc_w, fc_b, *, K, b_tile=None):
    """atten: (B, K, H, W)  conv_out: (B, C, H, W)  fc_w: (nclass, C)  fc_b: (nclass,)"""
    B = conv_out.shape[0]
    C = conv_out.shape[1]
    HW = conv_out.shape[2] * conv_out.shape[3]
    nclass = fc_w.shape[0]

    if b_tile is None:
        # Amortize per-step overhead, but keep >= 2 grid steps so the
        # "parallel" axis can shard across both TensorCores on v7x.
        b_tile = B // 2 if (B >= 2 and B % 2 == 0) else 1
    assert B % b_tile == 0, (B, b_tile)

    # Upstream layout / dtype prep (in a real model these fuse into producers):
    atten2 = atten.reshape(B, K, HW).astype(jnp.bfloat16)                        # (B, K, HW)
    conv2 = conv_out.reshape(B, C, HW).transpose(0, 2, 1).astype(jnp.bfloat16)   # (B, HW, C)
    w_t = fc_w.T.astype(jnp.float32)                                             # (C, nclass)
    bias2 = fc_b.reshape(1, nclass).astype(jnp.float32)                          # (1, nclass)

    out = pl.pallas_call(
        decoder_kernel,
        out_shape=jax.ShapeDtypeStruct((B, K, nclass), jnp.float32),
        grid_spec=pltpu.PrefetchScalarGridSpec(
            num_scalar_prefetch=0,
            grid=(B // b_tile,),
            in_specs=[
                pl.BlockSpec((b_tile, K, HW), lambda b: (b, 0, 0)),   # atten
                pl.BlockSpec((b_tile, HW, C), lambda b: (b, 0, 0)),   # conv_out (perm)
                pl.BlockSpec((C, nclass), lambda b: (0, 0)),          # fc weight (resident)
                pl.BlockSpec((1, nclass), lambda b: (0, 0)),          # fc bias   (resident)
            ],
            out_specs=pl.BlockSpec((b_tile, K, nclass), lambda b: (b, 0, 0)),
        ),
        compiler_params=pltpu.CompilerParams(
            dimension_semantics=("parallel",),
        ),
    )(atten2, conv2, w_t, bias2)
    return out


def reference_forward(atten, conv_out, fc_w, fc_b, *, K):
    # Mirrors the kernel's bf16-input / f32-accumulate numerics.
    B = conv_out.shape[0]
    C = conv_out.shape[1]
    a = atten.reshape(B, K, -1).astype(jnp.bfloat16).astype(jnp.float32)
    c = (
        conv_out.reshape(B, C, -1)
        .transpose(0, 2, 1)
        .astype(jnp.bfloat16)
        .astype(jnp.float32)
    )
    ao = jnp.einsum("bks,bsc->bkc", a, c)
    return ao @ fc_w.astype(jnp.float32).T + fc_b.astype(jnp.float32)


if __name__ == "__main__":
    # Small shapes consistent with the module: K=8 attention maps,
    # input_dim (channels) = 32, nclass = 16, spatial 16x16, batch 8
    # (-> B_TILE=4 per step, 2 grid steps).
    B, K, C, H, W, NCLASS = 8, 8, 32, 16, 16, 16

    key = jax.random.PRNGKey(0)
    k1, k2, k3, k4 = jax.random.split(key, 4)

    atten = jax.random.normal(k1, (B, K, H, W), dtype=jnp.float32)
    conv_out = jax.random.normal(k2, (B, C, H, W), dtype=jnp.float32)
    # Deterministic "init" of nn.Linear(input_dim=C, nclass) parameters.
    fc_w = jax.random.normal(k3, (NCLASS, C), dtype=jnp.float32) * 0.05
    fc_b = jax.random.normal(k4, (NCLASS,), dtype=jnp.float32) * 0.05

    out = decoder_forward(atten, conv_out, fc_w, fc_b, K=K)
    out = jax.block_until_ready(out)

    ref = reference_forward(atten, conv_out, fc_w, fc_b, K=K)
    assert out.shape == (B, K, NCLASS), out.shape
    assert jnp.allclose(out, ref, atol=1e-2, rtol=1e-2), float(
        jnp.max(jnp.abs(out - ref))
    )

    print("KERNEL_OK")
</pallas_src>

<mosaic_0001>
module attributes {stable_mosaic.version = 11 : i64} {
  func.func @decoder_kernel(%arg0: i32, %arg1: memref<4x8x256xbf16, #tpu.memory_space<vmem>>, %arg2: memref<4x256x32xbf16, #tpu.memory_space<vmem>>, %arg3: memref<32x16xf32, #tpu.memory_space<vmem>>, %arg4: memref<1x16xf32, #tpu.memory_space<vmem>>, %arg5: memref<4x8x16xf32, #tpu.memory_space<vmem>>) attributes {dimension_semantics = [#tpu.dimension_semantics<parallel>], iteration_bounds = array<i64: 2>, scalar_prefetch = 0 : i64, scratch_operands = 0 : i64, tpu.core_type = #tpu.core_type<tc>, window_params = [{transform_indices = @transform_0, window_bounds = array<i64: 4, 8, 256>}, {transform_indices = @transform_1, window_bounds = array<i64: 4, 256, 32>}, {pipeline_mode = #tpu.pipeline_mode<synchronous>, transform_indices = @transform_2, window_bounds = array<i64: 32, 16>}, {pipeline_mode = #tpu.pipeline_mode<synchronous>, transform_indices = @transform_3, window_bounds = array<i64: 1, 16>}, {transform_indices = @transform_4, window_bounds = array<i64: 4, 8, 16>}]} {
    %c0 = arith.constant 0 : index
    %c0_0 = arith.constant 0 : index
    %c0_1 = arith.constant 0 : index
    %0 = vector.load %arg1[%c0, %c0_0, %c0_1] : memref<4x8x256xbf16, #tpu.memory_space<vmem>>, vector<4x8x256xbf16>
    %c0_2 = arith.constant 0 : index
    %c0_3 = arith.constant 0 : index
    %c0_4 = arith.constant 0 : index
    %1 = vector.load %arg2[%c0_2, %c0_3, %c0_4] : memref<4x256x32xbf16, #tpu.memory_space<vmem>>, vector<4x256x32xbf16>
    "tpu.trace_start"() <{level = 10 : i32, message = "bks,bsc->bkc"}> : () -> ()
    %cst = arith.constant dense<0.000000e+00> : vector<4x8x32xf32>
    %2 = tpu.matmul %0, %1, %cst {dimension_numbers = #tpu.dot_dimension_numbers<[2], [1], [1], [2], [0, 0, 0, 1, 1, 2], [0], [0]>} : vector<4x8x256xbf16>, vector<4x256x32xbf16>, vector<4x8x32xf32> -> vector<4x8x32xf32>
    "tpu.trace_stop"() : () -> ()
    %3 = vector.shape_cast %2 : vector<4x8x32xf32> to vector<32x32xf32>
    %c0_5 = arith.constant 0 : index
    %c0_6 = arith.constant 0 : index
    %4 = vector.load %arg3[%c0_5, %c0_6] : memref<32x16xf32, #tpu.memory_space<vmem>>, vector<32x16xf32>
    %cst_7 = arith.constant dense<0.000000e+00> : vector<32x16xf32>
    %5 = tpu.matmul %3, %4, %cst_7 {dimension_numbers = #tpu.dot_dimension_numbers<[1], [0], [0], [1], [0, 0, 1, 1], [], []>} : vector<32x32xf32>, vector<32x16xf32>, vector<32x16xf32> -> vector<32x16xf32>
    %c0_8 = arith.constant 0 : index
    %c0_9 = arith.constant 0 : index
    %6 = vector.load %arg4[%c0_8, %c0_9] : memref<1x16xf32, #tpu.memory_space<vmem>>, vector<1x16xf32>
    %7 = vector.broadcast %6 : vector<1x16xf32> to vector<32x16xf32>
    %8 = arith.addf %5, %7 : vector<32x16xf32>
    %9 = vector.shape_cast %8 : vector<32x16xf32> to vector<4x8x16xf32>
    %c0_10 = arith.constant 0 : index
    %c0_11 = arith.constant 0 : index
    %c0_12 = arith.constant 0 : index
    %10 = vector.load %arg5[%c0_10, %c0_11, %c0_12] : memref<4x8x16xf32, #tpu.memory_space<vmem>>, vector<4x8x16xf32>
    tpu.vector_store %arg5[%c0_10, %c0_11, %c0_12], %9 {strides = array<i32>} : memref<4x8x16xf32, #tpu.memory_space<vmem>>, vector<4x8x16xf32>,
    return
  }
  func.func @transform_0(%arg0: i32) -> (i32, i32, i32) {
    %c0_i32 = arith.constant 0 : i32
    %c0_i32_0 = arith.constant 0 : i32
    %c0_i32_1 = arith.constant 0 : i32
    return %arg0, %c0_i32, %c0_i32_0 : i32, i32, i32
  }
  func.func @transform_1(%arg0: i32) -> (i32, i32, i32) {
    %c0_i32 = arith.constant 0 : i32
    %c0_i32_0 = arith.constant 0 : i32
    %c0_i32_1 = arith.constant 0 : i32
    return %arg0, %c0_i32, %c0_i32_0 : i32, i32, i32
  }
  func.func @transform_2(%arg0: i32) -> (i32, i32) {
    %c0_i32 = arith.constant 0 : i32
    %c0_i32_0 = arith.constant 0 : i32
    %c0_i32_1 = arith.constant 0 : i32
    return %c0_i32, %c0_i32_0 : i32, i32
  }
  func.func @transform_3(%arg0: i32) -> (i32, i32) {
    %c0_i32 = arith.constant 0 : i32
    %c0_i32_0 = arith.constant 0 : i32
    %c0_i32_1 = arith.constant 0 : i32
    return %c0_i32, %c0_i32_0 : i32, i32
  }
  func.func @transform_4(%arg0: i32) -> (i32, i32, i32) {
    %c0_i32 = arith.constant 0 : i32
    %c0_i32_0 = arith.constant 0 : i32
    %c0_i32_1 = arith.constant 0 : i32
    return %arg0, %c0_i32, %c0_i32_0 : i32, i32, i32
  }
}

</mosaic_0001>

<bundles_post_ra>
// kernel: decoder_forward.1
= control target key start
LH: loop header
LB: loop body
LE: loop exit
PB: predicated region body
PF: predicated region fallthrough
CT: control target
= control target key end

     0   :  { %9 = vsyncpa [#allocation3], 0  ;;  %s1694_s0 = inlined_call_operand.vmem [shape: bf16[8,8,256], index: 0, kind: input, shape index: {}]   ;;  %s1695_s1 = inlined_call_operand.vmem [shape: bf16[8,256,32], index: 1, kind: input, shape index: {}]   ;;  %s1696_s2 = inlined_call_operand.vmem [shape: f32[32,16], index: 2, kind: input, shape index: {}]   ;;  %s1697_s3 = inlined_call_operand.vmem [shape: f32[1,16], index: 3, kind: input, shape index: {}]   ;;  %s1698_s4 = inlined_call_operand.hbm [shape: f32[8,8,16], index: 4, kind: output, shape index: {}]  }
   0x1   :  { %11 = vsyncpa [#allocation3 + $0x1], 0  ;;  %s1508_s15 = smov 0   ;;  %s1510_s16 = smov 0  }
   0x2   :  { %s1512_s17 = smov 0   ;;  %s1514_s18 = smov 0  }
   0x3 LB: > { %s1529_s19 = sadd.s32 4294967295, %s1479_s18   ;;  %s1020_s20 = sadd.s32 4294967294, %s1479_s18   ;;  %s1479_s18 = sphi %s1514_s18, %s1704_s18   ;;  %s1475_s17 = sphi %s1512_s17, %s1703_s17   ;;  %s1471_s16 = sphi %s1510_s16, %s1702_s16   ;;  %s1467_s15 = sphi %s1508_s15, %s1701_s15  }
   0x4   : > { %s1533_s21 = sadd.s32 1, %s1479_s18   ;;  %s118_s22 = sadd.s32 1, %s1475_s17 }
   0x5   : > { %s115_s23 = ssub.s32 %s1479_s18, %s1533_s21  ;;  %p128_p0 = scmp.ne.s32.totalorder %s1475_s17, %s1471_s16 }
   0x6   : > { %p116_p1 = scmp.eq.s32.totalorder %s115_s23, 0  ;;  %p129_p2 = scmp.eq.s32.totalorder %s1529_s19, 1 }
   0x7   : > { %p134_p3 = scmp.ne.s32.totalorder %s1471_s16, %s1467_s15  ;;  %p135_p4 = scmp.eq.s32.totalorder %s1020_s20, 1 }
   0x8   : > { %s1544_s24 = scalar_select %p116_p1, %s1475_s17, %s118_s22  }
   0x9   : > { %p1546_p5 = por %p129_p2, %p128_p0  ;;  %p1550_p6 = por %p135_p4, %p134_p3 }
   0xa   : > { %p1023_p7 = scmp.ge.s32.totalorder %s1479_s18, 1  ;;  %p179_p8 = scmp.lt.s32.totalorder %s1479_s18, 3 }
   0xc   : > { %p180_p9 = pnand %p1023_p7, %p179_p8 }
   0xd   : > { %s1025_s27 = sshll.u32 (!%p180_p9), %s1529_s19, 2  ;;  %s1437_s22 = scalar_lea.hbm (!%p180_p9), %s1698_s4, 64 }
   0xe   : > { %183 = sbr.rel (%p180_p9) target bundleno = 361 (0x169), region = 36  ;;  %p213_p10 = scmp.lt.s32.totalorder (!%p180_p9), %s1025_s27, 7 }
  0x13   : > { %s1706_s27 = smov (!%p213_p10, %s1025_s27), 7  ;;  %vm883_vm0 = vcmask 261120   ;;  %vm925_vm1 = vcmask 130048  }
  0x14   : > { %s1297_s28 = sshll.u32 %s1706_s27, 7  ;;  %s1296_s6 = sshll.u32 %s1706_s27, 3 }
  0x15   : > { %s1563_s5 = scalar_lea.vmem %s1695_s1, %s1297_s28  ;;  %s1593_s9 = scalar_lea.vmem %s1694_s0, %s1296_s6 }
  0x16   : > { %v1305_v0 = vld [vmem:[%s1563_s5 + $0x38] sm:$0xff]  ;;  %v1304_v4 = vld [vmem:[%s1563_s5 + $0x30] sm:$0xff]  ;;  %v1303_v8 = vld [vmem:[%s1563_s5 + $0x28] sm:$0xff]  ;;  %s209_s27 = sand.u32 1, %s1471_s16   ;;  %s1362_s6 = sshll.u32 %s1529_s19, 5 }
  0x17   : > { %v1313_v1 = vld [vmem:[%s1563_s5 + $0x78] sm:$0xff]  ;;  %462 = vmatpush.bf16.msra.mxu0 %v1305_v0  ;;  %v1312_v5 = vld [vmem:[%s1563_s5 + $0x70] sm:$0xff]  ;;  %v1311_v9 = vld [vmem:[%s1563_s5 + $0x68] sm:$0xff]  ;;  %s1024_s28 = sshll.u32 %s209_s27, 5  ;;  %s931_s12 = scalar_lea.sflag [#allocation3], %s209_s27 }
  0x18   : > { %v1321_v2 = vld [vmem:[%s1563_s5 + $0xb8] sm:$0xff]  ;;  %475 = vmatpush.bf16.msra.mxu1 %v1313_v1  ;;  %v1320_v6 = vld [vmem:[%s1563_s5 + $0xb0] sm:$0xff]  ;;  %v1319_v10 = vld [vmem:[%s1563_s5 + $0xa8] sm:$0xff] }
  0x19   : > { %v1329_v3 = vld [vmem:[%s1563_s5 + $0xf8] sm:$0xff]  ;;  %591 = vmatpush.bf16.msra.mxu2 %v1321_v2  ;;  %v1328_v7 = vld [vmem:[%s1563_s5 + $0xf0] sm:$0xff]  ;;  %v1327_v11 = vld [vmem:[%s1563_s5 + $0xe8] sm:$0xff] }
  0x1a   : > { %604 = vmatpush.bf16.msra.mxu3 %v1329_v3  ;;  %v1302_v12 = vld [vmem:[%s1563_s5 + $0x20] sm:$0xff]  ;;  %v1301_v16 = vld [vmem:[%s1563_s5 + $0x18] sm:$0xff]  ;;  %v1300_v20 = vld [vmem:[%s1563_s5 + $0x10] sm:$0xff] }
  0x1b   : > { %463 = vmatpush.bf16.msra.mxu0 %v1304_v4  ;;  %v1310_v13 = vld [vmem:[%s1563_s5 + $0x60] sm:$0xff]  ;;  %v1309_v17 = vld [vmem:[%s1563_s5 + $0x58] sm:$0xff]  ;;  %v1308_v21 = vld [vmem:[%s1563_s5 + $0x50] sm:$0xff] }
  0x1c   : > { %476 = vmatpush.bf16.msra.mxu1 %v1312_v5  ;;  %v1318_v14 = vld [vmem:[%s1563_s5 + $0xa0] sm:$0xff]  ;;  %v1317_v18 = vld [vmem:[%s1563_s5 + $0x98] sm:$0xff]  ;;  %v1316_v22 = vld [vmem:[%s1563_s5 + $0x90] sm:$0xff] }
  0x1d   : > { %592 = vmatpush.bf16.msra.mxu2 %v1320_v6  ;;  %v1326_v15 = vld [vmem:[%s1563_s5 + $0xe0] sm:$0xff]  ;;  %v1325_v19 = vld [vmem:[%s1563_s5 + $0xd8] sm:$0xff]  ;;  %v1324_v23 = vld [vmem:[%s1563_s5 + $0xd0] sm:$0xff] }
  0x1e   : > { %605 = vmatpush.bf16.msra.mxu3 %v1328_v7  ;;  %v1299_v24 = vld [vmem:[%s1563_s5 + $0x8] sm:$0xff]  ;;  %v227_v29 = vld [vmem:[%s1593_s9] sm:$0xff]  ;;  %v1337_v38 = vld [vmem:[%s1563_s5 + $0x138] sm:$0xff] }
  0x1f   : > { %464 = vmatpush.bf16.msra.mxu0 %v1303_v8  ;;  %v1307_v25 = vld [vmem:[%s1563_s5 + $0x48] sm:$0xff]  ;;  %v1298_v30 = vld [vmem:[%s1563_s5] sm:$0xff]  ;;  %v360_v36 = vunpack.c.l.b16 %v227_v29  ;;  %v361_v37 = vunpack.c.h.b16 %v227_v29  ;;  %v1345_v39 = vld [vmem:[%s1563_s5 + $0x178] sm:$0xff] }
  0x20   : > { %477 = vmatpush.bf16.msra.mxu1 %v1311_v9  ;;  %v1315_v26 = vld [vmem:[%s1563_s5 + $0x88] sm:$0xff]  ;;  %v1306_v31 = vld [vmem:[%s1563_s5 + $0x40] sm:$0xff]  ;;  %v1353_v40 = vld [vmem:[%s1563_s5 + $0x1b8] sm:$0xff] }
  0x21   : > { %593 = vmatpush.bf16.msra.mxu2 %v1319_v10  ;;  %v1323_v27 = vld [vmem:[%s1563_s5 + $0xc8] sm:$0xff]  ;;  %v1314_v34 = vld [vmem:[%s1563_s5 + $0x80] sm:$0xff]  ;;  %v1361_v41 = vld [vmem:[%s1563_s5 + $0x1f8] sm:$0xff]  ;;  %v362_v44 = vpack.c.b16 %v360_v36, %v360_v36  ;;  %v363_v45 = vpack.c.b16 %v361_v37, %v361_v37 }
  0x22   : > { %606 = vmatpush.bf16.msra.mxu3 %v1327_v11  ;;  %v228_v28 = vld [vmem:[%s1593_s9 + $0x8] sm:$0xff]  ;;  %v1322_v35 = vld [vmem:[%s1563_s5 + $0xc0] sm:$0xff]  ;;  %v1336_v46 = vld [vmem:[%s1563_s5 + $0x130] sm:$0xff] }
  0x23   : > { %465 = vmatpush.bf16.msra.mxu0 %v1302_v12  ;;  %v489_v32 = vunpack.c.l.b16 %v228_v28  ;;  %v490_v33 = vunpack.c.h.b16 %v228_v28  ;;  %v1344_v47 = vld [vmem:[%s1563_s5 + $0x170] sm:$0xff]  ;;  %v1335_v50 = vld [vmem:[%s1563_s5 + $0x128] sm:$0xff]  ;;  %v1334_v54 = vld [vmem:[%s1563_s5 + $0x120] sm:$0xff] }
  0x24   : > { %478 = vmatpush.bf16.msra.mxu1 %v1310_v13  ;;  %v1352_v48 = vld [vmem:[%s1563_s5 + $0x1b0] sm:$0xff]  ;;  %v1343_v51 = vld [vmem:[%s1563_s5 + $0x168] sm:$0xff]  ;;  %v1342_v55 = vld [vmem:[%s1563_s5 + $0x160] sm:$0xff] }
  0x25   : > { %594 = vmatpush.bf16.msra.mxu2 %v1318_v14  ;;  %v491_v42 = vpack.c.b16 %v489_v32, %v489_v32  ;;  %v492_v43 = vpack.c.b16 %v490_v33, %v490_v33  ;;  %v1360_v49 = vld [vmem:[%s1563_s5 + $0x1f0] sm:$0xff]  ;;  %v1351_v52 = vld [vmem:[%s1563_s5 + $0x1a8] sm:$0xff]  ;;  %v1350_v56 = vld [vmem:[%s1563_s5 + $0x1a0] sm:$0xff] }
  0x26   : > { %607 = vmatpush.bf16.msra.mxu3 %v1326_v15  ;;  %v1359_v53 = vld [vmem:[%s1563_s5 + $0x1e8] sm:$0xff]  ;;  %v1358_v57 = vld [vmem:[%s1563_s5 + $0x1e0] sm:$0xff]  ;;  %v1333_v58 = vld [vmem:[%s1563_s5 + $0x118] sm:$0xff] }
  0x27   : > { %466 = vmatpush.bf16.msra.mxu0 %v1301_v16  ;;  %v1341_v59 = vld [vmem:[%s1563_s5 + $0x158] sm:$0xff]  ;;  %v1332_v62 = vld [vmem:[%s1563_s5 + $0x110] sm:$0xff]  ;;  %v1331_v2 = vld [vmem:[%s1563_s5 + $0x108] sm:$0xff] }
  0x28   : > { %479 = vmatpush.bf16.msra.mxu1 %v1309_v17  ;;  %v1349_v60 = vld [vmem:[%s1563_s5 + $0x198] sm:$0xff]  ;;  %v1340_v63 = vld [vmem:[%s1563_s5 + $0x150] sm:$0xff]  ;;  %v1339_v3 = vld [vmem:[%s1563_s5 + $0x148] sm:$0xff] }
  0x29   : > { %595 = vmatpush.bf16.msra.mxu2 %v1317_v18  ;;  %v1357_v61 = vld [vmem:[%s1563_s5 + $0x1d8] sm:$0xff]  ;;  %v1348_v0 = vld [vmem:[%s1563_s5 + $0x190] sm:$0xff]  ;;  %v1347_v5 = vld [vmem:[%s1563_s5 + $0x188] sm:$0xff] }
  0x2a   : > { %608 = vmatpush.bf16.msra.mxu3 %v1325_v19  ;;  %v1356_v1 = vld [vmem:[%s1563_s5 + $0x1d0] sm:$0xff]  ;;  %v1355_v6 = vld [vmem:[%s1563_s5 + $0x1c8] sm:$0xff]  ;;  %v230_v7 = vld [vmem:[%s1593_s9 + $0x18] sm:$0xff] }
  0x2b   : > { %467 = vmatpush.bf16.msra.mxu0 %v1300_v20  ;;  %v229_v4 = vld [vmem:[%s1593_s9 + $0x10] sm:$0xff]  ;;  %v1330_v10 = vld [vmem:[%s1563_s5 + $0x100] sm:$0xff]  ;;  %v747_v12 = vunpack.c.l.b16 %v230_v7  ;;  %v748_v13 = vunpack.c.h.b16 %v230_v7  ;;  %v878_v20 = vld [vmem:[%s1696_s2 + $0x18] sm:$0xff]  ;;  %s942_s9 = scalar_lea.hbm %s1698_s4, %s1362_s6 }
  0x2c   : > { %480 = vmatpush.bf16.msra.mxu1 %v1308_v21  ;;  %v618_v8 = vunpack.c.l.b16 %v229_v4  ;;  %v619_v9 = vunpack.c.h.b16 %v229_v4  ;;  %v1338_v11 = vld [vmem:[%s1563_s5 + $0x140] sm:$0xff]  ;;  %v877_v21 = vld [vmem:[%s1696_s2 + $0x10] sm:$0xff]  ;;  %s945_s11 = sshll.u32 %s942_s9, 4  ;;  %s946_s11 = int_to_ptr.hbm [resolvable:$true] %s945_s11 }
  0x2d   : > { %596 = vmatpush.bf16.msra.mxu2 %v1316_v22  ;;  %v1346_v14 = vld [vmem:[%s1563_s5 + $0x180] sm:$0xff]  ;;  %v749_v18 = vpack.c.b16 %v747_v12, %v747_v12  ;;  %v750_v19 = vpack.c.b16 %v748_v13, %v748_v13  ;;  %v876_v22 = vld [vmem:[%s1696_s2 + $0x8] sm:$0xff]  ;;  %s1431_s13 = sshra.s32 %s946_s11, 4  ;;  %s1432_s13 = int_to_ptr.hbm [resolvable:$true] %s1431_s13 }
  0x2e   : > { %609 = vmatpush.bf16.msra.mxu3 %v1324_v23  ;;  %v1354_v15 = vld [vmem:[%s1563_s5 + $0x1c0] sm:$0xff]  ;;  %v620_v16 = vpack.c.b16 %v618_v8, %v618_v8  ;;  %v621_v17 = vpack.c.b16 %v619_v9, %v619_v9  ;;  %s211_s5 = scalar_lea.vmem [#allocation2], %s1024_s28  ;;  %s1433_s19 = scalar_lea.hbm %s1432_s13, 32 }
  0x2f   : > { %468 = vmatpush.bf16.msra.mxu0 %v1299_v24  ;;  %v875_v23 = vld [vmem:[%s1696_s2] sm:$0xff]  ;;  %s943_s10 = sshll.u32 %s211_s5, 4  ;;  %p1434_p11 = scmp.ne.s32.totalorder %s1432_s13, %s1433_s19  ;;  %s944_s10 = int_to_ptr.vmem [resolvable:$true] %s943_s10 }
  0x30   : > { %481 = vmatpush.bf16.msra.mxu1 %v1307_v25  ;;  %p1438_p0 = scmp.lt.s32.totalorder %s1432_s13, %s1698_s4  ;;  %p1439_p1 = scmp.lt.s32.totalorder %s1437_s22, %s1433_s19 }
  0x31   : > { %597 = vmatpush.bf16.msra.mxu2 %v1315_v26  ;;  %p1435_p12 = pnand %p1434_p11, %p1546_p5 }
  0x32   : > { %610 = vmatpush.bf16.msra.mxu3 %v1323_v27  ;;  %p1440_p2 = por %p1439_p1, %p1438_p0 }
  0x33   : > { %469 = vmatpush.bf16.msra.mxu0 %v1298_v30  ;;  %p1436_p13 = pneg %p1435_p12 }
  0x34   : > { %482 = vmatpush.bf16.msra.mxu1 %v1306_v31 }
  0x35   : > { %598 = vmatpush.bf16.msra.mxu2 %v1314_v34  ;;  %p1441_p3 = pnand %p1440_p2, %p1436_p13 }
  0x36   : > { %611 = vmatpush.bf16.msra.mxu3 %v1322_v35  ;;  %470 = vmatmul.bf16.vlgmr.msra.gmra.mxu0 %v362_v44  ;;  %v1416_v44 = vld [vmem:[%s1697_s3] ss:$0 sm:$0xff] }
  0x37   : > { %720 = vmatpush.bf16.msrb.mxu0 %v1337_v38  ;;  %483 = vmatmul.bf16.vlgmr.msra.gmra.mxu1 %v363_v45 }
  0x38   : > { %733 = vmatpush.bf16.msrb.mxu1 %v1345_v39  ;;  %599 = vmatmul.bf16.vlgmr.msra.gmra.mxu2 %v491_v42 }
  0x39   : > { %849 = vmatpush.bf16.msrb.mxu2 %v1353_v40  ;;  %612 = vmatmul.bf16.vlgmr.msra.gmra.mxu3 %v492_v43 }
  0x3a   : > { %862 = vmatpush.bf16.msrb.mxu3 %v1361_v41 }
  0x3b   : > { %721 = vmatpush.bf16.msrb.mxu0 %v1336_v46 }
  0x3c   : > { %734 = vmatpush.bf16.msrb.mxu1 %v1344_v47 }
  0x3d   : > { %850 = vmatpush.bf16.msrb.mxu2 %v1352_v48 }
  0x3e   : > { %863 = vmatpush.bf16.msrb.mxu3 %v1360_v49 }
  0x3f   : > { %722 = vmatpush.bf16.msrb.mxu0 %v1335_v50 }
  0x40   : > { %735 = vmatpush.bf16.msrb.mxu1 %v1343_v51 }
  0x41   : > { %851 = vmatpush.bf16.msrb.mxu2 %v1351_v52 }
  0x42   : > { %864 = vmatpush.bf16.msrb.mxu3 %v1359_v53 }
  0x43   : > { %723 = vmatpush.bf16.msrb.mxu0 %v1334_v54 }
  0x44   : > { %736 = vmatpush.bf16.msrb.mxu1 %v1342_v55 }
  0x45   : > { %852 = vmatpush.bf16.msrb.mxu2 %v1350_v56 }
  0x46   : > { %865 = vmatpush.bf16.msrb.mxu3 %v1358_v57 }
  0x47   : > { %724 = vmatpush.bf16.msrb.mxu0 %v1333_v58 }
  0x48   : > { %737 = vmatpush.bf16.msrb.mxu1 %v1341_v59 }
  0x49   : > { %853 = vmatpush.bf16.msrb.mxu2 %v1349_v60 }
  0x4a   : > { %866 = vmatpush.bf16.msrb.mxu3 %v1357_v61 }
  0x4b   : > { %725 = vmatpush.bf16.msrb.mxu0 %v1332_v62 }
  0x4c   : > { %738 = vmatpush.bf16.msrb.mxu1 %v1340_v63 }
  0x4d   : > { %854 = vmatpush.bf16.msrb.mxu2 %v1348_v0 }
  0x4e   : > { %867 = vmatpush.bf16.msrb.mxu3 %v1356_v1 }
  0x4f   : > { %726 = vmatpush.bf16.msrb.mxu0 %v1331_v2 }
  0x50   : > { %739 = vmatpush.bf16.msrb.mxu1 %v1339_v3 }
  0x51   : > { %855 = vmatpush.bf16.msrb.mxu2 %v1347_v5 }
  0x52   : > { %868 = vmatpush.bf16.msrb.mxu3 %v1355_v6 }
  0x53   : > { %727 = vmatpush.bf16.msrb.mxu0 %v1330_v10 }
  0x54   : > { %740 = vmatpush.bf16.msrb.mxu1 %v1338_v11 }
  0x55   : > { %856 = vmatpush.bf16.msrb.mxu2 %v1346_v14 }
  0x56   : > { %869 = vmatpush.bf16.msrb.mxu3 %v1354_v15  ;;  %728 = vmatmul.bf16.vlgmr.msrb.gmra.mxu0 %v620_v16 }
  0x57   : > { %741 = vmatmul.bf16.vlgmr.msrb.gmra.mxu1 %v621_v17  ;;  %908 = vmatpush.msra.mxu0 %v878_v20 }
  0x58   : > { %857 = vmatmul.bf16.vlgmr.msrb.gmra.mxu2 %v749_v18  ;;  %1363 = vmatpush.msra.mxu1 %v878_v20 }
  0x59   : > { %870 = vmatmul.bf16.vlgmr.msrb.gmra.mxu3 %v750_v19  ;;  %1364 = vmatpush.msra.mxu2 %v878_v20 }
  0x5a   : > { %1365 = vmatpush.msra.mxu3 %v878_v20  ;;  %909 = vmatpush.msra.mxu0 %v877_v21 }
  0x5b   : > { %1366 = vmatpush.msra.mxu1 %v877_v21  ;;  %1367 = vmatpush.msra.mxu2 %v877_v21 }
  0x5c   : > { %1368 = vmatpush.msra.mxu3 %v877_v21  ;;  %910 = vmatpush.msra.mxu0 %v876_v22 }
  0x5d   : > { %1369 = vmatpush.msra.mxu1 %v876_v22  ;;  %1370 = vmatpush.msra.mxu2 %v876_v22 }
  0x5e   : > { %1371 = vmatpush.msra.mxu3 %v876_v22  ;;  %911 = vmatpush.msra.mxu0 %v875_v23 }
  0x5f   : > { %1372 = vmatpush.msra.mxu1 %v875_v23  ;;  %1373 = vmatpush.msra.mxu2 %v875_v23 }
  0x60   : > { %1374 = vmatpush.msra.mxu3 %v875_v23 }
  0xb3   : > { %v471_v24 = vpop.f32.mrf.mxu0 }
  0xb4   : > { %v484_v25 = vpop.f32.mrf.mxu1 }
  0xb5   : > { %v485_v26 = vadd.f32 %v484_v25, %v471_v24 }
  0xb7   : > { %1287 = vmatmul.msk.f32.vlgmr.msra.gmra.mxu0 %vm883_vm0, %v485_v26 }
  0xbb   : > { %v600_v27 = vpop.f32.mrf.mxu2  ;;  %v473_v30 = vpop.f32.mrf.mxu0 }
  0xbc   : > { %v613_v28 = vpop.f32.mrf.mxu3  ;;  %v486_v31 = vpop.f32.mrf.mxu1 }
  0xbd   : > { %v614_v29 = vadd.f32 %v613_v28, %v600_v27 }
  0xbf   : > { %1288 = vmatmul.msk.f32.vlgmr.msra.gmra.mxu1 %vm883_vm0, %v614_v29 }
  0xc3   : > { %v602_v32 = vpop.f32.mrf.mxu2 }
  0xc4   : > { %v615_v33 = vpop.f32.mrf.mxu3 }
  0xd3   : > { %v729_v34 = vpop.f32.mrf.mxu0 }
  0xd4   : > { %v742_v35 = vpop.f32.mrf.mxu1 }
  0xd5   : > { %v743_v36 = vadd.f32 %v742_v35, %v729_v34 }
  0xd7   : > { %1289 = vmatmul.msk.f32.vlgmr.msra.gmra.mxu2 %vm883_vm0, %v743_v36 }
  0xdb   : > { %v858_v37 = vpop.f32.mrf.mxu2  ;;  %v731_v40 = vpop.f32.mrf.mxu0 }
  0xdc   : > { %v871_v38 = vpop.f32.mrf.mxu3  ;;  %v744_v41 = vpop.f32.mrf.mxu1 }
  0xdd   : > { %v872_v39 = vadd.f32 %v871_v38, %v858_v37 }
  0xdf   : > { %1290 = vmatmul.msk.f32.vlgmr.msra.gmra.mxu3 %vm883_vm0, %v872_v39 }
  0xe3   : > { %v860_v42 = vpop.f32.mrf.mxu2 }
  0xe4   : > { %v873_v43 = vpop.f32.mrf.mxu3 }
 0x134   : > { %v913_v45 = vpop.f32.mrf.mxu0 }
 0x135   : > { %v914_v46 = vadd.f32 %v1416_v44, %v913_v45 }
 0x137   : > { %926 = vst.msk [vmem:[%s211_s5] sm:$0xff] %vm925_vm1, %v914_v46 }
 0x13c   : > { %v916_v47 = vpop.f32.mrf.mxu1 }
 0x13d   : > { %v917_v48 = vadd.f32 %v1416_v44, %v916_v47 }
 0x13f   : > { %927 = vst.msk [vmem:[%s211_s5 + $0x8] sm:$0xff] %vm925_vm1, %v917_v48 }
 0x15a   : > { %v919_v49 = vpop.f32.mrf.mxu2 }
 0x15b   : > { %v920_v50 = vadd.f32 %v1416_v44, %v919_v49 }
 0x15d   : > { %928 = vst.msk [vmem:[%s211_s5 + $0x10] sm:$0xff] %vm925_vm1, %v920_v50 }
 0x162   : > { %v922_v51 = vpop.f32.mrf.mxu3 }
 0x163   : > { %v923_v52 = vadd.f32 %v1416_v44, %v922_v51 }
 0x165   : > { %929 = vst.msk [vmem:[%s211_s5 + $0x18] sm:$0xff] %vm925_vm1, %v923_v52 }
 0x166   : > { %1444 = shalt.err (!%p1441_p3)
}
 0x167   : > { %s1481_s27 = smov 128   ;;  %s1482_s29 = smov 8  }
 0x168   : > { %1375 = dma.vmem_to_hbm [thread:$0]  (%p1546_p5), %s944_s10, 512, %s946_s11, %s931_s12, %s1481_s27, %s1481_s27, %s1482_s29  }
 0x169 PF: > { %p1381_p4 = scmp.ge.s32.totalorder %s1479_s18, 2  ;;  %s960_s30 = sand.u32 1, %s1467_s15  }
 0x16a   : > { %s961_s5 = scalar_lea.sflag [#allocation3], %s960_s30 }
 0x16b   : > { %p1378_p7 = pnand %p1381_p4, %p1550_p6 }
 0x16d   : > { %p1379_p8 = pneg %p1378_p7 }
 0x16f   : > { %1462 = dma.done.wait (%p1379_p8), %s961_s5, 512  }
 0x170   : > { %1464 = vsyncadd (%p1379_p8), %s961_s5, 4294966784  ;;  %p14_p9 = scmp.ge.s32.totalorder %s1533_s21, 4   ;;  %s1701_s15 = smov %s1471_s16 }
 0x171   : > { %s1702_s16 = smov %s1475_s17  ;;  %s1703_s17 = smov %s1544_s24 }
 0x172   : > { %s1704_s18 = smov %s1533_s21  ;;  %16 = sbr.rel (!%p14_p9) target bundleno = 3 (0x3), region = 74 }
 0x177   :  { %967 = vsyncpa [#allocation3], 1 }
 0x178   :  { %969 = vsyncpa [#allocation3 + $0x1], 1 }

</bundles_post_ra>
